<compile_context>
chip_gen: v6e
topology: v6e:2x2x1
jax: 0.10.0
libtpu: 0.0.40
codegen_flags: <defaults>
</compile_context>

<pallas_src>
import functools

import jax
import jax.numpy as jnp
from jax.experimental import pallas as pl
from jax.experimental.pallas import tpu as pltpu


# ----------------------------------------------------------------------------
# Fused kernel: branch convs + ReLU -> concat (on-chip) -> out_conv + ReLU
# ----------------------------------------------------------------------------
def _comb_conv_kernel(xb_ref, xl_ref, xr_ref, wb_ref, bb_ref, wo_ref, bo_ref,
                      o_ref, *, K_B, out_k, TL, L, out_l, max_lb, d, C_out):
    """One (batch, length-tile) grid cell.

    xb_ref : (1, C_in, TL)            body block of x (partial on last tile)
    xl_ref : (1, 1, C_in, LW)         left halo columns (zero-padded at edges)
    xr_ref : (1, 1, C_in, RW)         right halo columns (zero-padded at edges)
    wb_ref : (n_br*C_out, K_B*C_in)   folded branch weights
    bb_ref : (n_br*C_out, 1)          branch biases
    wo_ref : (out_k*C_out, C_cat)     out_conv weights stacked by tap
    bo_ref : (C_out, 1)               out_conv bias
    o_ref  : (1, C_out, TL)           output tile (lane-dense on L)
    """
    TL_ext = TL + out_k - 1
    t_idx = pl.program_id(1)

    # --- assemble the (C_in, d + TL + halo) input window on-chip -------------
    body = xb_ref[0]                                          # (C_in, TL)
    # the last tile's body block is partial: zero columns at global pos >= L
    bpos = jax.lax.broadcasted_iota(jnp.int32, (1, TL), 1) + t_idx * TL
    body = jnp.where(bpos < L, body, 0.0)
    x = jnp.concatenate([xl_ref[0, 0], body, xr_ref[0, 0]], axis=-1)

    # --- all branch convs as ONE matmul (taps folded into the contraction) ---
    xcol = jnp.concatenate([x[:, d + a:d + a + TL_ext] for a in range(K_B)],
                           axis=0)                            # (K_B*C_in, TL_ext)
    y_br = jnp.dot(wb_ref[...], xcol,
                   preferred_element_type=jnp.float32) + bb_ref[...]
    y_br = jnp.maximum(y_br, 0.0)                             # branch ReLU

    # --- channel concat [x ; branch outputs], kept entirely on-chip ----------
    x_id = x[:, d + max_lb:d + max_lb + TL_ext]               # identity rows
    cat = jnp.concatenate([x_id, y_br], axis=0)               # (C_cat, TL_ext)

    # torch zero-pads the *concatenated* tensor before out_conv, so anything
    # outside the valid sequence range [0, L) must contribute zero.
    pos = jax.lax.broadcasted_iota(jnp.int32, (1, TL_ext), 1) + (t_idx * TL - out_l)
    cat = jnp.where(jnp.logical_and(pos >= 0, pos < L), cat, 0.0)

    # TODO(synk): nn.Dropout(drop_rate) is the identity at inference (eval
    # mode); training-mode dropout is not implemented here.

    # --- out_conv: one stacked matmul + per-tap shifted accumulation ---------
    # (avoids materializing the (out_k*C_cat, TL) im2col in VMEM)
    q = jnp.dot(wo_ref[...], cat, preferred_element_type=jnp.float32)
    acc = q[0:C_out, 0:TL]
    for a in range(1, out_k):
        acc = acc + q[a * C_out:(a + 1) * C_out, a:a + TL]
    y = jnp.maximum(acc + bo_ref[...], 0.0)                   # out ReLU
    o_ref[0] = y.astype(o_ref.dtype)


# ----------------------------------------------------------------------------
# Weight packing: fold torch-layout Conv1d weights into the matmul operands
# ----------------------------------------------------------------------------
def _pack_params(params, kernel_sizes, out_kernel_size, in_channels, out_channels):
    n_br = len(kernel_sizes)
    lefts = [(k - 1) // 2 for k in kernel_sizes]
    rights = [(k - 1) - l for l, k in zip(lefts, kernel_sizes)]
    max_lb, max_rb = max(lefts), max(rights)
    K_B = max_lb + max_rb + 1                     # union tap span of all branches

    w_all = jnp.zeros((n_br * out_channels, K_B, in_channels), jnp.float32)
    b_all = []
    for i, ((w, b), k) in enumerate(zip(params["convs"], kernel_sizes)):
        # w: torch layout (C_out, C_in, k)
        off = max_lb - lefts[i]                   # align this branch's taps
        w_kc = jnp.transpose(w, (0, 2, 1))        # (C_out, k, C_in)
        w_all = w_all.at[i * out_channels:(i + 1) * out_channels,
                         off:off + k, :].set(w_kc)
        b_all.append(b)
    w_branch = w_all.reshape(n_br * out_channels, K_B * in_channels)
    b_branch = jnp.concatenate(b_all).reshape(n_br * out_channels, 1)

    c_cat = in_channels + n_br * out_channels
    w_out, b_out = params["out_conv"]             # (C_out, C_cat, out_k), (C_out,)
    # stacked by tap: rows [a*C_out:(a+1)*C_out] hold w_out[:, :, a]
    w_out = jnp.transpose(w_out, (2, 0, 1)).reshape(out_kernel_size * out_channels,
                                                    c_cat)
    b_out = b_out.reshape(out_channels, 1)
    return (w_branch, b_branch, w_out, b_out), (max_lb, max_rb, K_B, c_cat)


# ----------------------------------------------------------------------------
# CombConvLayer forward (wrapper): x (N, C_in, L) -> (N, C_out, L)
# ----------------------------------------------------------------------------
def comb_conv_layer(x_ncl, params, kernel_sizes, out_kernel_size, tile_l=8192):
    N, C_in, L = x_ncl.shape
    C_out = params["convs"][0][0].shape[0]
    n_br = len(kernel_sizes)
    out_k = out_kernel_size

    (w_branch, b_branch, w_out, b_out), (max_lb, max_rb, K_B, C_cat) = _pack_params(
        params, kernel_sizes, out_kernel_size, C_in, C_out)

    out_l = (out_k - 1) // 2
    out_r = (out_k - 1) - out_l

    # ---- length tiling -------------------------------------------------------
    # Big tiles amortize the ~0.35 us per-grid-step overhead; tile_l=8192 keeps
    # live VMEM at a few MB, which fits the scoped-VMEM defaults on v5e/v6e and
    # v7x (64 MiB physical).  Raise tile_l / vmem_limit_bytes only after
    # re-deriving the budget for the target generation.
    if L <= tile_l:
        TL, n_tiles = L, 1
    else:
        assert tile_l % 128 == 0, "tile_l must be a multiple of 128 when tiling"
        TL, n_tiles = tile_l, pl.cdiv(L, tile_l)

    left_pad = out_l + max_lb                 # halo columns needed left of a tile
    right_span = out_r + max_rb               # halo columns needed right of a tile
    LW, RW = max(left_pad, 1), max(right_span, 1)
    d = LW - left_pad                         # unused leading window columns

    # ---- tiny per-tile halo side arrays (a few columns; negligible HBM) ------
    starts = jnp.arange(n_tiles, dtype=jnp.int32) * TL
    pos_l = starts[:, None] + jnp.arange(LW, dtype=jnp.int32)[None, :] - LW
    pos_r = starts[:, None] + TL + jnp.arange(RW, dtype=jnp.int32)[None, :]

    def halo(pos):
        g = x_ncl[:, :, jnp.clip(pos, 0, L - 1)]               # (N, C_in, T, W)
        g = jnp.where(jnp.logical_and(pos >= 0, pos < L), g, 0.0)
        return jnp.transpose(g, (0, 2, 1, 3))                  # (N, T, C_in, W)

    x_left, x_right = halo(pos_l), halo(pos_r)

    kernel = functools.partial(_comb_conv_kernel, K_B=K_B, out_k=out_k, TL=TL,
                               L=L, out_l=out_l, max_lb=max_lb, d=d, C_out=C_out)

    TL_ext = TL + out_k - 1
    flops = 2 * N * n_tiles * TL_ext * ((n_br * C_out) * (K_B * C_in)
                                        + (out_k * C_out) * C_cat)
    bytes_accessed = 4 * (x_ncl.size + x_left.size + x_right.size
                          + N * C_out * L + w_branch.size + b_branch.size
                          + w_out.size + b_out.size)

    return pl.pallas_call(
        kernel,
        out_shape=jax.ShapeDtypeStruct((N, C_out, L), x_ncl.dtype),
        grid=(N, n_tiles),
        in_specs=[
            pl.BlockSpec((1, C_in, TL), lambda n, t: (n, 0, t)),       # x body
            pl.BlockSpec((1, 1, C_in, LW), lambda n, t: (n, t, 0, 0)),  # left halo
            pl.BlockSpec((1, 1, C_in, RW), lambda n, t: (n, t, 0, 0)),  # right halo
            pl.BlockSpec(w_branch.shape, lambda n, t: (0, 0)),
            pl.BlockSpec(b_branch.shape, lambda n, t: (0, 0)),
            pl.BlockSpec(w_out.shape, lambda n, t: (0, 0)),
            pl.BlockSpec(b_out.shape, lambda n, t: (0, 0)),
        ],
        out_specs=pl.BlockSpec((1, C_out, TL), lambda n, t: (n, 0, t)),
        compiler_params=pltpu.CompilerParams(
            dimension_semantics=("parallel", "parallel")),
        cost_estimate=pl.CostEstimate(flops=int(flops), transcendentals=0,
                                      bytes_accessed=int(bytes_accessed)),
    )(x_ncl, x_left, x_right, w_branch, b_branch, w_out, b_out)


# ----------------------------------------------------------------------------
# Deterministic parameter init (synthetic; torch Conv1d weight layout)
# ----------------------------------------------------------------------------
def init_params(key, in_channels, out_channels, kernel_sizes, out_kernel_size):
    params = {"convs": []}
    for i, k in enumerate(kernel_sizes):
        kw, kb = jax.random.split(jax.random.fold_in(key, i))
        w = 0.3 * jax.random.normal(kw, (out_channels, in_channels, k), jnp.float32)
        b = 0.1 * jax.random.normal(kb, (out_channels,), jnp.float32)
        params["convs"].append((w, b))
    c_cat = in_channels + len(kernel_sizes) * out_channels
    kw, kb = jax.random.split(jax.random.fold_in(key, 100))
    w = 0.3 * jax.random.normal(kw, (out_channels, c_cat, out_kernel_size), jnp.float32)
    b = 0.1 * jax.random.normal(kb, (out_channels,), jnp.float32)
    params["out_conv"] = (w, b)
    return params


# ----------------------------------------------------------------------------
# Pure-JAX reference (lax.conv, HIGHEST precision) to validate the Pallas path
# ----------------------------------------------------------------------------
def ref_forward(x_ncl, params, kernel_sizes, out_kernel_size):
    def conv(x, w, b, k):
        left = (k - 1) // 2
        right = (k - 1) - left
        y = jax.lax.conv_general_dilated(
            x, w, window_strides=(1,), padding=[(left, right)],
            dimension_numbers=("NCH", "OIH", "NCH"),
            precision=jax.lax.Precision.HIGHEST)
        return jax.nn.relu(y + b[None, :, None])

    outs = [x_ncl]
    for (w, b), k in zip(params["convs"], kernel_sizes):
        outs.append(conv(x_ncl, w, b, k))
    cat = jnp.concatenate(outs, axis=1)
    w_out, b_out = params["out_conv"]
    return conv(cat, w_out, b_out, out_kernel_size)


def _check(out, ref, name):
    # Kernel matmuls use DEFAULT MXU precision (single bf16 pass) per the perf
    # review; tolerance is therefore scale-relative rather than 1e-5.
    err = float(jnp.max(jnp.abs(out - ref)))
    tol = 5e-2 * max(1.0, float(jnp.max(jnp.abs(ref))))
    assert err <= tol, (name, err, tol)


if __name__ == "__main__":
    # Small shapes consistent with the module's forward: x is (N, C_in, L).
    N, C_IN, L = 2, 4, 16
    OUT_CHANNELS = 8
    KERNEL_SIZES = [3, 5]
    OUT_KERNEL_SIZE = 3

    key = jax.random.PRNGKey(0)
    kx, kp = jax.random.split(key)
    x = jax.random.normal(kx, (N, C_IN, L), jnp.float32)
    params = init_params(kp, C_IN, OUT_CHANNELS, KERNEL_SIZES, OUT_KERNEL_SIZE)

    out = jax.block_until_ready(
        comb_conv_layer(x, params, KERNEL_SIZES, OUT_KERNEL_SIZE))
    ref = jax.block_until_ready(
        ref_forward(x, params, KERNEL_SIZES, OUT_KERNEL_SIZE))
    assert out.shape == (N, OUT_CHANNELS, L), out.shape
    _check(out, ref, "single-tile")

    # Multi-tile grid path: L not a multiple of the tile -> partial last blocks
    # on both the input body and the (unpadded) output.
    L2 = 300
    x2 = jax.random.normal(jax.random.fold_in(key, 7), (N, C_IN, L2), jnp.float32)
    out2 = jax.block_until_ready(
        comb_conv_layer(x2, params, KERNEL_SIZES, OUT_KERNEL_SIZE, tile_l=128))
    ref2 = jax.block_until_ready(
        ref_forward(x2, params, KERNEL_SIZES, OUT_KERNEL_SIZE))
    assert out2.shape == (N, OUT_CHANNELS, L2), out2.shape
    _check(out2, ref2, "multi-tile")

    print("KERNEL_OK")
</pallas_src>

<mosaic_0001>
module attributes {stable_mosaic.version = 11 : i64} {
  func.func @_comb_conv_kernel(%arg0: i32, %arg1: i32, %arg2: memref<1x4x16xf32, #tpu.memory_space<vmem>>, %arg3: memref<1x1x4x3xf32, #tpu.memory_space<vmem>>, %arg4: memref<1x1x4x3xf32, #tpu.memory_space<vmem>>, %arg5: memref<16x20xf32, #tpu.memory_space<vmem>>, %arg6: memref<16x1xf32, #tpu.memory_space<vmem>>, %arg7: memref<24x20xf32, #tpu.memory_space<vmem>>, %arg8: memref<8x1xf32, #tpu.memory_space<vmem>>, %arg9: memref<1x8x16xf32, #tpu.memory_space<vmem>>) attributes {dimension_semantics = [#tpu.dimension_semantics<parallel>, #tpu.dimension_semantics<parallel>], iteration_bounds = array<i64: 2, 1>, scalar_prefetch = 0 : i64, scratch_operands = 0 : i64, tpu.core_type = #tpu.core_type<tc>, window_params = [{transform_indices = @transform_0, window_bounds = array<i64: 1, 4, 16>}, {transform_indices = @transform_1, window_bounds = array<i64: 1, 1, 4, 3>}, {transform_indices = @transform_2, window_bounds = array<i64: 1, 1, 4, 3>}, {pipeline_mode = #tpu.pipeline_mode<synchronous>, transform_indices = @transform_3, window_bounds = array<i64: 16, 20>}, {pipeline_mode = #tpu.pipeline_mode<synchronous>, transform_indices = @transform_4, window_bounds = array<i64: 16, 1>}, {pipeline_mode = #tpu.pipeline_mode<synchronous>, transform_indices = @transform_5, window_bounds = array<i64: 24, 20>}, {pipeline_mode = #tpu.pipeline_mode<synchronous>, transform_indices = @transform_6, window_bounds = array<i64: 8, 1>}, {transform_indices = @transform_7, window_bounds = array<i64: 1, 8, 16>}]} {
    %c0 = arith.constant 0 : index
    %c0_0 = arith.constant 0 : index
    %c0_1 = arith.constant 0 : index
    %0 = vector.load %arg2[%c0, %c0_0, %c0_1] : memref<1x4x16xf32, #tpu.memory_space<vmem>>, vector<1x4x16xf32>
    %1 = vector.shape_cast %0 : vector<1x4x16xf32> to vector<4x16xf32>
    %2 = tpu.iota {dimensions = array<i32: 1>} : vector<1x16xi32>
    %c16_i32 = arith.constant 16 : i32
    %3 = arith.muli %arg1, %c16_i32 : i32
    %4 = vector.broadcast %3 : i32 to vector<1x16xi32>
    %5 = arith.addi %2, %4 : vector<1x16xi32>
    %c16_i32_2 = arith.constant 16 : i32
    %6 = vector.broadcast %c16_i32_2 : i32 to vector<1x16xi32>
    %7 = arith.cmpi slt, %5, %6 : vector<1x16xi32>
    %cst = arith.constant 0.000000e+00 : f32
    %8 = vector.shape_cast %7 : vector<1x16xi1> to vector<1x16xi1>
    %9 = vector.broadcast %8 : vector<1x16xi1> to vector<4x16xi1>
    %10 = vector.broadcast %cst : f32 to vector<4x16xf32>
    %11 = arith.select %9, %1, %10 : vector<4x16xi1>, vector<4x16xf32>
    %c0_3 = arith.constant 0 : index
    %c0_4 = arith.constant 0 : index
    %c0_5 = arith.constant 0 : index
    %c0_6 = arith.constant 0 : index
    %12 = vector.load %arg3[%c0_3, %c0_4, %c0_5, %c0_6] : memref<1x1x4x3xf32, #tpu.memory_space<vmem>>, vector<1x1x4x3xf32>
    %13 = vector.shape_cast %12 : vector<1x1x4x3xf32> to vector<4x3xf32>
    %c0_7 = arith.constant 0 : index
    %c0_8 = arith.constant 0 : index
    %c0_9 = arith.constant 0 : index
    %c0_10 = arith.constant 0 : index
    %14 = vector.load %arg4[%c0_7, %c0_8, %c0_9, %c0_10] : memref<1x1x4x3xf32, #tpu.memory_space<vmem>>, vector<1x1x4x3xf32>
    %15 = vector.shape_cast %14 : vector<1x1x4x3xf32> to vector<4x3xf32>
    %16 = tpu.concatenate %13, %11, %15 in 1 : vector<4x3xf32>, vector<4x16xf32>, vector<4x3xf32> -> vector<4x22xf32>
    %17 = vector.extract_strided_slice %16 {offsets = [0, 0], sizes = [4, 18], strides = [1, 1]} : vector<4x22xf32> to vector<4x18xf32>
    %18 = vector.extract_strided_slice %16 {offsets = [0, 1], sizes = [4, 18], strides = [1, 1]} : vector<4x22xf32> to vector<4x18xf32>
    %19 = vector.extract_strided_slice %16 {offsets = [0, 2], sizes = [4, 18], strides = [1, 1]} : vector<4x22xf32> to vector<4x18xf32>
    %20 = vector.extract_strided_slice %16 {offsets = [0, 3], sizes = [4, 18], strides = [1, 1]} : vector<4x22xf32> to vector<4x18xf32>
    %21 = vector.extract_strided_slice %16 {offsets = [0, 4], sizes = [4, 18], strides = [1, 1]} : vector<4x22xf32> to vector<4x18xf32>
    %22 = tpu.concatenate %17, %18, %19, %20, %21 in 0 : vector<4x18xf32>, vector<4x18xf32>, vector<4x18xf32>, vector<4x18xf32>, vector<4x18xf32> -> vector<20x18xf32>
    %c0_11 = arith.constant 0 : index
    %c0_12 = arith.constant 0 : index
    %23 = vector.load %arg5[%c0_11, %c0_12] : memref<16x20xf32, #tpu.memory_space<vmem>>, vector<16x20xf32>
    %cst_13 = arith.constant dense<0.000000e+00> : vector<16x18xf32>
    %24 = tpu.matmul %23, %22, %cst_13 {dimension_numbers = #tpu.dot_dimension_numbers<[1], [0], [0], [1], [0, 0, 1, 1], [], []>} : vector<16x20xf32>, vector<20x18xf32>, vector<16x18xf32> -> vector<16x18xf32>
    %c0_14 = arith.constant 0 : index
    %c0_15 = arith.constant 0 : index
    %25 = vector.load %arg6[%c0_14, %c0_15] : memref<16x1xf32, #tpu.memory_space<vmem>>, vector<16x1xf32>
    %26 = vector.broadcast %25 : vector<16x1xf32> to vector<16x18xf32>
    %27 = arith.addf %24, %26 : vector<16x18xf32>
    %cst_16 = arith.constant 0.000000e+00 : f32
    %28 = vector.broadcast %cst_16 : f32 to vector<16x18xf32>
    %29 = arith.maximumf %27, %28 : vector<16x18xf32>
    %30 = vector.extract_strided_slice %16 {offsets = [0, 2], sizes = [4, 18], strides = [1, 1]} : vector<4x22xf32> to vector<4x18xf32>
    %31 = tpu.concatenate %30, %29 in 0 : vector<4x18xf32>, vector<16x18xf32> -> vector<20x18xf32>
    %32 = tpu.iota {dimensions = array<i32: 1>} : vector<1x18xi32>
    %c16_i32_17 = arith.constant 16 : i32
    %33 = arith.muli %arg1, %c16_i32_17 : i32
    %c1_i32 = arith.constant 1 : i32
    %34 = arith.subi %33, %c1_i32 : i32
    %35 = vector.broadcast %34 : i32 to vector<1x18xi32>
    %36 = arith.addi %32, %35 : vector<1x18xi32>
    %c0_i32 = arith.constant 0 : i32
    %37 = vector.broadcast %c0_i32 : i32 to vector<1x18xi32>
    %38 = arith.cmpi sge, %36, %37 : vector<1x18xi32>
    %c16_i32_18 = arith.constant 16 : i32
    %39 = vector.broadcast %c16_i32_18 : i32 to vector<1x18xi32>
    %40 = arith.cmpi slt, %36, %39 : vector<1x18xi32>
    %41 = arith.andi %38, %40 : vector<1x18xi1>
    %cst_19 = arith.constant 0.000000e+00 : f32
    %42 = vector.shape_cast %41 : vector<1x18xi1> to vector<1x18xi1>
    %43 = vector.broadcast %42 : vector<1x18xi1> to vector<20x18xi1>
    %44 = vector.broadcast %cst_19 : f32 to vector<20x18xf32>
    %45 = arith.select %43, %31, %44 : vector<20x18xi1>, vector<20x18xf32>
    %c0_20 = arith.constant 0 : index
    %c0_21 = arith.constant 0 : index
    %46 = vector.load %arg7[%c0_20, %c0_21] : memref<24x20xf32, #tpu.memory_space<vmem>>, vector<24x20xf32>
    %cst_22 = arith.constant dense<0.000000e+00> : vector<24x18xf32>
    %47 = tpu.matmul %46, %45, %cst_22 {dimension_numbers = #tpu.dot_dimension_numbers<[1], [0], [0], [1], [0, 0, 1, 1], [], []>} : vector<24x20xf32>, vector<20x18xf32>, vector<24x18xf32> -> vector<24x18xf32>
    %48 = vector.extract_strided_slice %47 {offsets = [0, 0], sizes = [8, 16], strides = [1, 1]} : vector<24x18xf32> to vector<8x16xf32>
    %49 = vector.extract_strided_slice %47 {offsets = [8, 1], sizes = [8, 16], strides = [1, 1]} : vector<24x18xf32> to vector<8x16xf32>
    %50 = arith.addf %48, %49 : vector<8x16xf32>
    %51 = vector.extract_strided_slice %47 {offsets = [16, 2], sizes = [8, 16], strides = [1, 1]} : vector<24x18xf32> to vector<8x16xf32>
    %52 = arith.addf %50, %51 : vector<8x16xf32>
    %c0_23 = arith.constant 0 : index
    %c0_24 = arith.constant 0 : index
    %53 = vector.load %arg8[%c0_23, %c0_24] : memref<8x1xf32, #tpu.memory_space<vmem>>, vector<8x1xf32>
    %54 = vector.broadcast %53 : vector<8x1xf32> to vector<8x16xf32>
    %55 = arith.addf %52, %54 : vector<8x16xf32>
    %cst_25 = arith.constant 0.000000e+00 : f32
    %56 = vector.broadcast %cst_25 : f32 to vector<8x16xf32>
    %57 = arith.maximumf %55, %56 : vector<8x16xf32>
    %c0_26 = arith.constant 0 : index
    %c0_27 = arith.constant 0 : index
    %c0_28 = arith.constant 0 : index
    %58 = vector.load %arg9[%c0_26, %c0_27, %c0_28] : memref<1x8x16xf32, #tpu.memory_space<vmem>>, vector<1x8x16xf32>
    %59 = vector.shape_cast %58 : vector<1x8x16xf32> to vector<8x16xf32>
    %60 = vector.shape_cast %57 : vector<8x16xf32> to vector<1x8x16xf32>
    tpu.vector_store %arg9[%c0_26, %c0_27, %c0_28], %60 {strides = array<i32>} : memref<1x8x16xf32, #tpu.memory_space<vmem>>, vector<1x8x16xf32>,
    return
  }
  func.func @transform_0(%arg0: i32, %arg1: i32) -> (i32, i32, i32) {
    %c0_i32 = arith.constant 0 : i32
    %c0_i32_0 = arith.constant 0 : i32
    return %arg0, %c0_i32, %arg1 : i32, i32, i32
  }
  func.func @transform_1(%arg0: i32, %arg1: i32) -> (i32, i32, i32, i32) {
    %c0_i32 = arith.constant 0 : i32
    %c0_i32_0 = arith.constant 0 : i32
    %c0_i32_1 = arith.constant 0 : i32
    return %arg0, %arg1, %c0_i32, %c0_i32_0 : i32, i32, i32, i32
  }
  func.func @transform_2(%arg0: i32, %arg1: i32) -> (i32, i32, i32, i32) {
    %c0_i32 = arith.constant 0 : i32
    %c0_i32_0 = arith.constant 0 : i32
    %c0_i32_1 = arith.constant 0 : i32
    return %arg0, %arg1, %c0_i32, %c0_i32_0 : i32, i32, i32, i32
  }
  func.func @transform_3(%arg0: i32, %arg1: i32) -> (i32, i32) {
    %c0_i32 = arith.constant 0 : i32
    %c0_i32_0 = arith.constant 0 : i32
    %c0_i32_1 = arith.constant 0 : i32
    return %c0_i32, %c0_i32_0 : i32, i32
  }
  func.func @transform_4(%arg0: i32, %arg1: i32) -> (i32, i32) {
    %c0_i32 = arith.constant 0 : i32
    %c0_i32_0 = arith.constant 0 : i32
    %c0_i32_1 = arith.constant 0 : i32
    return %c0_i32, %c0_i32_0 : i32, i32
  }
  func.func @transform_5(%arg0: i32, %arg1: i32) -> (i32, i32) {
    %c0_i32 = arith.constant 0 : i32
    %c0_i32_0 = arith.constant 0 : i32
    %c0_i32_1 = arith.constant 0 : i32
    return %c0_i32, %c0_i32_0 : i32, i32
  }
  func.func @transform_6(%arg0: i32, %arg1: i32) -> (i32, i32) {
    %c0_i32 = arith.constant 0 : i32
    %c0_i32_0 = arith.constant 0 : i32
    %c0_i32_1 = arith.constant 0 : i32
    return %c0_i32, %c0_i32_0 : i32, i32
  }
  func.func @transform_7(%arg0: i32, %arg1: i32) -> (i32, i32, i32) {
    %c0_i32 = arith.constant 0 : i32
    %c0_i32_0 = arith.constant 0 : i32
    return %arg0, %c0_i32, %arg1 : i32, i32, i32
  }
}

</mosaic_0001>

<bundles_post_ra>
// kernel: tpu_custom_call.1
= control target key start
LH: loop header
LB: loop body
LE: loop exit
PB: predicated region body
PF: predicated region fallthrough
CT: control target
= control target key end

     0   :  { %12 = vsyncpa [#allocation3], 0  ;;  %s1168_s0 = inlined_call_operand.vmem [shape: f32[2,4,16], index: 0, kind: input, shape index: {}]   ;;  %s1169_s1 = inlined_call_operand.vmem [shape: f32[2,1,4,3], index: 1, kind: input, shape index: {}]   ;;  %s1170_s2 = inlined_call_operand.vmem [shape: f32[2,1,4,3], index: 2, kind: input, shape index: {}]   ;;  %s1171_s3 = inlined_call_operand.vmem [shape: f32[16,20], index: 3, kind: input, shape index: {}]   ;;  %s1172_s4 = inlined_call_operand.vmem [shape: f32[16,1], index: 4, kind: input, shape index: {}]   ;;  %s1173_s5 = inlined_call_operand.vmem [shape: f32[24,20], index: 5, kind: input, shape index: {}]   ;;  %s1174_s6 = inlined_call_operand.vmem [shape: f32[8,1], index: 6, kind: input, shape index: {}]   ;;  %s1175_s7 = inlined_call_operand.hbm [shape: f32[2,8,16], index: 7, kind: output, shape index: {}]  }
   0x1   :  { %14 = vsyncpa [#allocation3 + $0x1], 0  ;;  %s1013_s24 = smov 0   ;;  %s1015_s25 = smov 0  }
   0x2   :  { %s1017_s26 = smov 0   ;;  %s1019_s27 = smov 0  }
   0x3   :  { %s1021_s28 = smov 0   ;;  %s1023_s29 = smov 0  }
   0x4 LB: > { %s760_s30 = sadd.s32 4294967295, %s960_s29   ;;  %s761_s8 = sadd.s32 4294967294, %s960_s29   ;;  %s960_s29 = sphi %s1023_s29, %s20_s29   ;;  %s956_s28 = sphi %s1021_s28, %s1182_s28   ;;  %s952_s27 = sphi %s1019_s27, %s1181_s27   ;;  %s948_s26 = sphi %s1017_s26, %s1180_s26   ;;  %s944_s25 = sphi %s1015_s25, %s1179_s25   ;;  %s940_s24 = sphi %s1013_s24, %s1178_s24  }
   0x5   : > { %s32_s9 = sadd.s32 1, %s956_s28  ;;  %s209_s10 = sadd.s32 1, %s948_s26 }
   0x6   : > { %p34_p0 = scmp.ge.s32.totalorder %s32_s9, 2  ;;  %p219_p1 = scmp.ne.s32.totalorder %s948_s26, %s944_s25 }
   0x7   : > { %p220_p2 = scmp.eq.s32.totalorder %s760_s30, 1  ;;  %p225_p3 = scmp.ne.s32.totalorder %s944_s25, %s940_s24 }
   0x8   : > { %s1184_s9 = smov (%p34_p0, %s32_s9), 0  ;;  %p226_p5 = scmp.eq.s32.totalorder %s761_s8, 1 }
   0x9   : > { %p1053_p4 = por %p220_p2, %p219_p1  ;;  %s204_s12 = ssub.s32 %s956_s28, %s1184_s9 }
   0xa   : > { %p764_p6 = scmp.ge.s32.totalorder %s960_s29, 1  ;;  %p207_p7 = scmp.eq.s32.totalorder %s204_s12, 0 }
   0xb   : > { %p1060_p8 = por %p226_p5, %p225_p3  ;;  %p286_p9 = scmp.lt.s32.totalorder %s960_s29, 3 }
   0xc   : > { %s1066_s14 = scalar_select %p207_p7, %s948_s26, %s209_s10  }
   0xd   : > { %p287_p10 = pnand %p764_p6, %p286_p9 }
   0xe   : > { %p334_p11 = scmp.lt.s32.totalorder (!%p287_p10), %s952_s27, 1  ;;  %s962_s23 = smov (!%p287_p10), 3  }
   0xf   : > { %290 = sbr.rel (%p287_p10) target bundleno = 1042 (0x412), region = 48  ;;  %s963_s30 = smov (!%p287_p10), 19  }
  0x10   : > { %s965_s18 = smov (!%p287_p10), 124   ;;  %s967_s21 = smov (!%p287_p10), 126  }
  0x11   : > { %s331_s8 = sand.u32 (!%p287_p10), 1, %s944_s25   ;;  %s972_s20 = smov (!%p287_p10), [#allocation2]  }
  0x12   : > { %s765_s10 = sshll.u32 (!%p287_p10), %s331_s8, 3 }
  0x14   : > { %v356_v0 = vlaneseq  ;;  %s335_s15 = scalar_select %p334_p11, %s952_s27, 1  ;;  %vm375_vm1 = vcmask 23552   ;;  %vm377_vm2 = vcmask 154624   ;;  %v395_v7 = vld [vmem:[%s1171_s3] sm:$0xff]  ;;  %vm409_vm3 = vcmask 162816   ;;  %v398_v13 = vld [vmem:[%s1172_s4 + $0x8] sm:$0xff] }
  0x15   : > { %799 = vmatprep.mubr.msk.f32.mxu0 %vm409_vm3, %v395_v7  ;;  %v964_v11 = vmov 0   ;;  %v397_v14 = vld [vmem:[%s1172_s4] sm:$0xff]  ;;  %vm392_vm4 = vcmask 1043456   ;;  %v396_v21 = vld [vmem:[%s1171_s3 + $0x8] sm:$0xff]  ;;  %v970_v33 = vmov 0.0   ;;  %vm971_vm5 = vmmov 0  }
  0x16   : > { %v1070_v1 = vand.u32 127, %v356_v0  ;;  %s766_s16 = sshll.u32 %s335_s15, 2  ;;  %882 = vset.pattern.permute.xlu0 %v964_v11  ;;  %883 = vset.pattern.permute.xlu1 %v964_v11  ;;  %v634_v38 = vld [vmem:[%s1174_s6] sm:$0xff]  ;;  %v530_v45 = vld [vmem:[%s1173_s5 + $0x8] sm:$0xff]  ;;  %v531_v46 = vld [vmem:[%s1173_s5 + $0x10] sm:$0xff]  ;;  %s333_s15 = scalar_lea.vmem [#allocation2], %s765_s10 }
  0x17   : > { %s340_s19 = scalar_lea.vmem %s1168_s0, %s766_s16  ;;  %s354_s22 = scalar_lea.vmem %s1170_s2, %s766_s16  ;;  %802 = vmatprep.subr.mxu1 %v970_v33  ;;  %808 = vmatprep.mubr.msk.f32.mxu1 %vm971_vm5, %v970_v33  ;;  %v529_v43 = vld [vmem:[%s1173_s5] sm:$0xff]  ;;  %vm642_vm9 = vcmask 130048  }
  0x18   : > { %vm361_vm0 = vcmp.lt.s32.totalorder %v1070_v1, 16  ;;  %v355_v2 = vld [vmem:[%s340_s19] sm:$0xf]  ;;  %s347_s12 = scalar_lea.vmem %s1169_s1, %s766_s16  ;;  %s966_s16 = smov 125   ;;  %v510_v39 = vadd.s32 4294967295, %v1070_v1 }
  0x19   : > { %v364_v3 = vsel %vm361_vm0, %v355_v2, 0.0  ;;  %v366_v4 = vld [vmem:[%s354_s22] sm:$0xf]  ;;  %s968_s22 = smov 127   ;;  %s659_s17 = sshll.u32 %s333_s15, 4  ;;  %s660_s17 = int_to_ptr.vmem [resolvable:$true] %s659_s17 }
  0x1a   : > { %368 = vrot.lane.b32.xlu0 %v364_v3, %s962_s23  ;;  %v365_v6 = vld [vmem:[%s347_s12] sm:$0xf]  ;;  %s969_s12 = smov 2   ;;  %vm511_vm6 = vcmp.ge.s32.totalorder %v510_v39, 0  ;;  %vm512_vm7 = vcmp.lt.s32.totalorder %v510_v39, 16  ;;  %s884_s19 = scalar_lea.vmem %s660_s17, 128 }
  0x1b   : > { %vm513_vm8 = vmand %vm511_vm6, %vm512_vm7  ;;  %p885_p12 = scmp.ne.s32.totalorder %s660_s17, %s884_s19  ;;  %s888_s23 = sshll.u32 %s972_s20, 4  ;;  %s889_s23 = int_to_ptr.vmem [resolvable:$false] %s888_s23 }
  0x1c   : > { %p891_p1 = scmp.lt.s32.totalorder %s660_s17, %s889_s23 }
  0x1d   : > { %p886_p13 = pnand %p885_p12, %p1053_p4 }
  0x1e   : > { %372 = vrot.lane.b32.xlu0 %v366_v4, %s963_s30 }
  0x1f   : > { %p887_p0 = pneg %p886_p13 }
  0x8c   : > { %v369_v5 = vpop.permute.xlu0 %368 }
  0x8d   : > { %v376_v8 = vsel %vm375_vm1, %v365_v6, %v369_v5 }
  0x90   : > { %v373_v9 = vpop.permute.xlu0 %372 }
  0x91   : > { %v378_v10 = vsel %vm377_vm2, %v376_v8, %v373_v9 }
  0x92   : > { %390 = vrot.lane.b32.xlu1 %v378_v10, %s965_s18  ;;  %v380_v12 = vrot.slane %v378_v10, 4 }
  0x94   : > { %387 = vrot.lane.b32.xlu0 %v380_v12, %s966_s16 }
  0x96   : > { %384 = vrot.lane.b32.xlu1 %v378_v10, %s967_s21 }
  0x98   : > { %406 = vperm.xlu0 %882, %v398_v13  }
  0x9a   : > { %381 = vrot.lane.b32.xlu1 %v380_v12, %s968_s22 }
  0x9e   : > { %401 = vperm.xlu1 %883, %v397_v14  }
 0x104   : > { %v391_v15 = vpop.permute.xlu1 %390 }
 0x105   : > { %793 = vmatprep.subr.msk.mxu0 %vm392_vm4, %v391_v15 }
 0x106   : > { %794 = vmatpush3.msk.msra.mxu0 %vm392_vm4, %v391_v15  ;;  %v388_v16 = vpop.permute.xlu0 %387 }
 0x108   : > { %v385_v17 = vpop.permute.xlu1 %384 }
 0x109   : > { %v394_v18 = vsel %vm392_vm4, %v385_v17, %v388_v16 }
 0x10a   : > { %795 = vmatprep.subr.mxu0 %v394_v18 }
 0x10b   : > { %796 = vmatpush3.msra.mxu0 %v394_v18 }
 0x10c   : > { %v382_v19 = vpop.permute.xlu1 %381 }
 0x10d   : > { %v393_v20 = vsel %vm392_vm4, %v378_v10, %v382_v19 }
 0x10e   : > { %797 = vmatprep.subr.mxu0 %v393_v20 }
 0x10f   : > { %798 = vmatpush3.msra.mxu0 %v393_v20 }
 0x110   : > { %800 = vmatmul.mubr.msk.f32.vlgmr.msra.gmra.mxu0 %vm409_vm3, %v396_v21 }
 0x113   : > { %v407_v22 = vpop.permute.xlu0 %406 }
 0x119   : > { %v402_v24 = vpop.permute.xlu1 %401 }
 0x1d0   : > { %v801_v23 = vpop.f32.mrf.mxu0 }
 0x1d1   : > { %v490_v25 = vadd.f32 %v801_v23, %v407_v22 }
 0x1d2   : > { %v484_v26 = vpop.f32.mrf.mxu0 }
 0x1d3   : > { %v494_v27 = vmax.f32 %v490_v25, 0.0  ;;  %v485_v28 = vadd.f32 %v484_v26, %v402_v24 }
 0x1d5   : > { %v498_v29 = vrot.slane %v494_v27, 4  ;;  %v493_v30 = vmax.f32 %v485_v28, 0.0 }
 0x1d7   : > { %v497_v31 = vrot.slane %v493_v30, 4  ;;  %504 = vrot.lane.b32.xlu1 %v498_v29, %s969_s12 }
 0x1d9   : > { %v499_v32 = vsel %vm392_vm4, %v497_v31, %v498_v29 }
 0x1da   : > { %502 = vrot.lane.b32.xlu0 %v499_v32, %s969_s12 }
 0x1db   : > { %500 = vrot.lane.b32.xlu1 %v497_v31, %s969_s12  ;;  %s779_s12 = sshll.u32 %s952_s27, 7  ;;  %s890_s27 = scalar_lea.vmem %s889_s23, 256 }
 0x1dc   : > { %s657_s16 = scalar_lea.hbm %s1175_s7, %s779_s12  ;;  %p892_p2 = scmp.lt.s32.totalorder %s890_s27, %s884_s19 }
 0x1de   : > { %p893_p3 = por %p892_p2, %p891_p1 }
 0x1e0   : > { %p894_p5 = pnand %p893_p3, %p887_p0 }
 0x249   : > { %v505_v34 = vpop.permute.xlu1 %504 }
 0x24a   : > { %521 = vrot.lane.b32.xlu0 %v505_v34, %s967_s21 }
 0x24c   : > { %v503_v35 = vpop.permute.xlu0 %502 }
 0x24d   : > { %v501_v36 = vpop.permute.xlu1 %500  ;;  %519 = vrot.lane.b32.xlu1 %v503_v35, %s967_s21 }
 0x24e   : > { %v507_v37 = vsel %vm392_vm4, %v378_v10, %v501_v36 }
 0x24f   : > { %517 = vrot.lane.b32.xlu0 %v507_v37, %s967_s21 }
 0x251   : > { %637 = vperm.xlu1 %883, %v634_v38  }
 0x2bc   : > { %v522_v40 = vpop.permute.xlu0 %521 }
 0x2bd   : > { %v528_v41 = vsel %vm513_vm8, %v522_v40, 0.0 }
 0x2be   : > { %803 = vmatpush3.msk.msra.mxu1 %vm392_vm4, %v528_v41 }
 0x2bf   : > { %v520_v42 = vpop.permute.xlu1 %519  ;;  %804 = vmatprep.subr.mxu1 %v970_v33 }
 0x2c0   : > { %805 = vmatpush3.msk.msra.mxu1 %vm513_vm8, %v520_v42 }
 0x2c1   : > { %806 = vmatprep.subr.mxu1 %v970_v33  ;;  %v518_v44 = vpop.permute.xlu0 %517 }
 0x2c2   : > { %807 = vmatpush3.msk.msra.mxu1 %vm513_vm8, %v518_v44 }
 0x2c3   : > { %809 = vmatmul.mubr.msk.f32.vlgmr.msra.gmra.mxu1 %vm409_vm3, %v529_v43 }
 0x2c4   : > { %811 = vmatprep.mubr.msk.f32.mxu1 %vm971_vm5, %v970_v33 }
 0x2c7   : > { %812 = vmatmul.mubr.msk.f32.gmra.mxu1 %vm409_vm3, %v530_v45 }
 0x2c8   : > { %814 = vmatprep.mubr.msk.f32.mxu1 %vm971_vm5, %v970_v33 }
 0x2cb   : > { %815 = vmatmul.mubr.msk.f32.gmra.mxu1 %vm409_vm3, %v531_v46 }
 0x2cc   : > { %v638_v53 = vpop.permute.xlu1 %637 }
 0x383   : > { %v610_v47 = vpop.f32.mrf.mxu1 }
 0x385   : > { %v810_v48 = vpop.f32.mrf.mxu1 }
 0x387   : > { %v615_v49 = vpop.f32.mrf.mxu1 }
 0x388   : > { %625 = vrot.lane.b32.xlu0 %v615_v49, %s968_s22 }
 0x389   : > { %v813_v50 = vpop.f32.mrf.mxu1 }
 0x38b   : > { %v620_v51 = vpop.f32.mrf.mxu1 }
 0x38c   : > { %630 = vrot.lane.b32.xlu1 %v620_v51, %s967_s21  ;;  %s645_s21 = scalar_lea.sflag [#allocation3], %s331_s8 }
 0x38d   : > { %v816_v52 = vpop.f32.mrf.mxu1 }
 0x3fa   : > { %v626_v54 = vpop.permute.xlu0 %625 }
 0x3fb   : > { %v628_v55 = vadd.f32 %v626_v54, %v610_v47 }
 0x3fe   : > { %v631_v56 = vpop.permute.xlu1 %630 }
 0x3ff   : > { %v633_v57 = vadd.f32 %v631_v56, %v628_v55 }
 0x401   : > { %v640_v58 = vadd.f32 %v638_v53, %v633_v57 }
 0x403   : > { %v641_v59 = vmax.f32 %v640_v58, 0.0 }
 0x405   : > { %643 = vst.msk [vmem:[%s333_s15] sm:$0xff] %vm642_vm9, %v641_v59 }
 0x406   : > { %897 = shalt.err (!%p894_p5)
}
 0x407   : > { %s898_s30 = scalar_lea.hbm %s657_s16, 128  ;;  %s902_s12 = scalar_lea.hbm %s1175_s7, 256 }
 0x408   : > { %p899_p6 = scmp.ne.s32.totalorder %s657_s16, %s898_s30  ;;  %p903_p10 = scmp.lt.s32.totalorder %s657_s16, %s1175_s7 }
 0x409   : > { %p904_p11 = scmp.lt.s32.totalorder %s902_s12, %s898_s30 }
 0x40a   : > { %p900_p7 = pnand %p899_p6, %p1053_p4 }
 0x40b   : > { %p905_p12 = por %p904_p11, %p903_p10 }
 0x40c   : > { %p901_p9 = pneg %p900_p7 }
 0x40e   : > { %p906_p13 = pnand %p905_p12, %p901_p9 }
 0x410   : > { %909 = shalt.err (!%p906_p13)
}
 0x411   : > { %817 = dma.vmem_to_hbm [thread:$0]  (%p1053_p4), %s660_s17, 128, %s657_s16, %s645_s21  }
 0x412 PF: > { %p823_p0 = scmp.ge.s32.totalorder %s960_s29, 2  ;;  %s671_s18 = sand.u32 1, %s940_s24  }
 0x413   : > { %s672_s19 = scalar_lea.sflag [#allocation3], %s671_s18 }
 0x414   : > { %p820_p1 = pnand %p823_p0, %p1060_p8 }
 0x416   : > { %p821_p2 = pneg %p820_p1 }
 0x418   : > { %935 = dma.done.wait (%p821_p2), %s672_s19, 128  }
 0x419   : > { %937 = vsyncadd (%p821_p2), %s672_s19, 4294967168  ;;  %s20_s29 = sadd.s32 1, %s960_s29   ;;  %s1178_s24 = smov %s944_s25 }
 0x41a   : > { %p17_p3 = scmp.ge.s32.totalorder %s20_s29, 4   ;;  %s1179_s25 = smov %s948_s26 }
 0x41b   : > { %s1180_s26 = smov %s1066_s14  ;;  %s1181_s27 = smov %s956_s28 }
 0x41c   : > { %s1182_s28 = smov %s1184_s9  ;;  %19 = sbr.rel (!%p17_p3) target bundleno = 4 (0x4), region = 89 }
 0x421   :  { %677 = vsyncpa [#allocation3], 1 }
 0x422   :  { %679 = vsyncpa [#allocation3 + $0x1], 1 }

</bundles_post_ra>
